<compile_context>
chip_gen: v7x
topology: tpu7x:2x2x1
jax: 0.10.0
libtpu: 0.0.40
codegen_flags: <defaults>
</compile_context>

<pallas_src>
import jax
import jax.numpy as jnp
from jax import lax
from jax.experimental import pallas as pl
from jax.experimental.pallas import tpu as pltpu


# ---------------------------------------------------------------------------
# Kernels
# ---------------------------------------------------------------------------

def _argmax_count_kernel(y_true_ref, y_pred_ref, out_ref, acc_ref):
    """Multiclass path: pred = argmax(logits, -1); count pred == label.

    Grid = (2, nb): axis 0 is a parallel split (one partial count per half),
    axis 1 is the reduction over row blocks of that half.
    """
    i = pl.program_id(1)

    @pl.when(i == 0)
    def _():
        acc_ref[...] = jnp.zeros_like(acc_ref)

    logits = y_pred_ref[...]                               # (tn, C), original dtype
    labels = y_true_ref[...]                               # (tn, 1) int32
    tn, c = logits.shape
    # First-index argmax (matches torch.argmax tie behaviour):
    # row max + masked index-min.
    row_max = jnp.max(logits, axis=-1, keepdims=True)      # (tn, 1)
    col_ids = lax.broadcasted_iota(jnp.int32, (tn, c), 1)
    preds = jnp.min(jnp.where(logits == row_max, col_ids, c),
                    axis=-1, keepdims=True)                # (tn, 1) int32
    # Padded rows carry label -1 -> never counted.
    acc_ref[...] += (preds == labels).astype(jnp.int32)

    @pl.when(i == pl.num_programs(1) - 1)
    def _():
        total = jnp.sum(acc_ref[...])                      # int32 scalar
        out_ref[...] = jnp.zeros_like(out_ref) + total     # lane-dense full store


def _threshold_count_kernel(y_true_ref, y_pred_ref, out_ref, acc_ref):
    """Binary 1-D path (lane-dense): pred = (p > 0.5); count pred == label."""
    i = pl.program_id(1)

    @pl.when(i == 0)
    def _():
        acc_ref[...] = jnp.zeros_like(acc_ref)

    probs = y_pred_ref[...]                                # (tr, 128), original dtype
    labels = y_true_ref[...]                               # (tr, 128) int32
    half = jnp.asarray(0.5, probs.dtype)
    preds = (probs > half).astype(jnp.int32)
    # Padded slots carry label -1 -> never counted.
    acc_ref[...] += (preds == labels).astype(jnp.int32)

    @pl.when(i == pl.num_programs(1) - 1)
    def _():
        total = jnp.sum(acc_ref[...])
        out_ref[...] = jnp.zeros_like(out_ref) + total


# ---------------------------------------------------------------------------
# pallas_call wrapper
# ---------------------------------------------------------------------------

def _pallas_count(kernel, y_true_2d, y_pred_2d, tn, acc_shape, cost):
    """Gridded Pallas reduction.  Returns the total correct-count (int32)."""
    rows, w = y_pred_2d.shape
    lw = y_true_2d.shape[1]
    assert rows % (2 * tn) == 0, (rows, tn)
    nb = rows // (2 * tn)                                  # blocks per parallel half

    out = pl.pallas_call(
        kernel,
        # One (8, 128) lane-dense block per parallel half (satisfies the
        # (8, 128) block-shape rule; unmasked full-width store).
        out_shape=jax.ShapeDtypeStruct((16, 128), jnp.int32),
        grid_spec=pltpu.PrefetchScalarGridSpec(
            num_scalar_prefetch=0,
            grid=(2, nb),
            in_specs=[
                pl.BlockSpec((tn, lw), lambda p, i: (p * nb + i, 0)),
                pl.BlockSpec((tn, w), lambda p, i: (p * nb + i, 0)),
            ],
            out_specs=pl.BlockSpec((8, 128), lambda p, i: (p, 0)),
            scratch_shapes=[pltpu.VMEM(acc_shape, jnp.int32)],
        ),
        compiler_params=pltpu.CompilerParams(
            dimension_semantics=("parallel", "arbitrary")),
        cost_estimate=cost,
    )(y_true_2d, y_pred_2d)

    # Each half's partial count is broadcast across its (8, 128) block.
    return out[0, 0] + out[8, 0]


# ---------------------------------------------------------------------------
# Public API
# ---------------------------------------------------------------------------

_VMEM_BUDGET = 6 << 20          # bytes for all double-buffered tiles + scratch;
                                # stays well under every generation's scoped VMEM.


def _round_up(x, m):
    return ((x + m - 1) // m) * m


def measure(y_true, y_pred, metric="acc"):
    """JAX/Pallas equivalent of Measure(metric)(y_true, y_pred)."""
    y_true = jnp.squeeze(y_true)
    y_pred = jnp.squeeze(y_pred)

    if metric in ("ap", "auc"):
        # TODO(synk): ranking metrics need a global sort over scores (sklearn
        # average_precision / roc_auc); no clean Pallas reduction equivalent.
        raise NotImplementedError(f"metric {metric!r} not implemented in Pallas")
    if metric not in ("acc", "micro-f1"):
        # TODO(synk): 'macro-f1' needs per-class TP/FP/FN; not implemented here.
        raise ValueError(f"Unsupported metric {metric}")
    if y_true.ndim != 1:
        # TODO(synk): multilabel branch ((y_pred > 0).float() + sklearn f1) not implemented.
        raise NotImplementedError("multilabel y_true not supported")

    n = int(y_true.shape[0])
    y_true_i = y_true.astype(jnp.int32)
    itemsize = int(jnp.dtype(y_pred.dtype).itemsize)

    if y_pred.ndim == 1:
        # Binary threshold path: lane-dense (rows, 128) layout.
        # Per-row VMEM cost: probs x2 buffers + labels x2 (int32) + acc.
        per_row = 2 * 128 * itemsize + 2 * 128 * 4 + 128 * 4
        rows_half = _round_up(pl.cdiv(pl.cdiv(n, 128), 2), 8)
        tr = max(8, min((_VMEM_BUDGET // per_row // 8) * 8, 2048, rows_half))
        n_pad = _round_up(n, 2 * tr * 128)
        probs = jnp.pad(y_pred, (0, n_pad - n)).reshape(n_pad // 128, 128)
        labels = jnp.pad(y_true_i, (0, n_pad - n),
                         constant_values=-1).reshape(n_pad // 128, 128)
        cost = pl.CostEstimate(
            flops=3 * n_pad, transcendentals=0,
            bytes_accessed=n_pad * (itemsize + 4) + 16 * 128 * 4)
        correct = _pallas_count(_threshold_count_kernel, labels, probs, tr,
                                acc_shape=(tr, 128), cost=cost)
    else:
        # Multiclass argmax path: (rows, C) with classes on the lane axis.
        c = int(y_pred.shape[1])
        # Per-row VMEM cost: logits x2 buffers + lane-padded labels x2 + acc.
        per_row = 2 * c * itemsize + 2 * 128 * 4 + 128 * 4
        tn = max(8, min((_VMEM_BUDGET // per_row // 8) * 8, 8192,
                        _round_up(pl.cdiv(n, 2), 8)))
        n_pad = _round_up(n, 2 * tn)
        logits = jnp.pad(y_pred, ((0, n_pad - n), (0, 0)))
        labels = jnp.pad(y_true_i, (0, n_pad - n),
                         constant_values=-1).reshape(n_pad, 1)
        cost = pl.CostEstimate(
            flops=4 * n_pad * c, transcendentals=0,
            bytes_accessed=n_pad * c * itemsize + n_pad * 4 + 16 * 128 * 4)
        correct = _pallas_count(_argmax_count_kernel, labels, logits, tn,
                                acc_shape=(tn, 1), cost=cost)

    # accuracy == micro-f1 for single-label classification
    return correct.astype(jnp.float32) / jnp.float32(n)


class Measure:
    """Thin parity wrapper matching the PyTorch module's call signature."""

    def __init__(self, metric):
        self.metric = metric

    def __call__(self, y_true, y_pred):
        return measure(y_true, y_pred, self.metric)

    def __repr__(self):
        return f"{self.__class__.__name__}({self.metric})"


# ---------------------------------------------------------------------------
# Self-test
# ---------------------------------------------------------------------------

if __name__ == "__main__":
    key = jax.random.PRNGKey(0)
    k1, k2, k3, k4, k5, k6 = jax.random.split(key, 6)

    # --- multiclass path: y_true (N, 1) labels, y_pred (N, C) f32 logits ---
    N, C = 64, 8
    y_true = jax.random.randint(k1, (N, 1), 0, C)
    y_pred = jax.random.normal(k2, (N, C), jnp.float32)

    acc = jax.block_until_ready(measure(y_true, y_pred, metric="acc"))
    mf1 = jax.block_until_ready(measure(y_true, y_pred, metric="micro-f1"))
    ref = jnp.mean((jnp.argmax(y_pred, -1) == jnp.squeeze(y_true)).astype(jnp.float32))
    assert abs(float(acc) - float(ref)) < 1e-6, (acc, ref)
    assert abs(float(mf1) - float(ref)) < 1e-6, (mf1, ref)

    # --- bf16 logits stay bf16 end-to-end (no wrapper f32 cast) ---
    y_pred_bf16 = y_pred.astype(jnp.bfloat16)
    acc_bf = jax.block_until_ready(measure(y_true, y_pred_bf16, metric="acc"))
    ref_bf = jnp.mean((jnp.argmax(y_pred_bf16, -1) == jnp.squeeze(y_true)).astype(jnp.float32))
    assert abs(float(acc_bf) - float(ref_bf)) < 1e-6, (acc_bf, ref_bf)

    # --- non-aligned N exercises the pad + label-mask path ---
    N2, C2 = 50, 5
    y_true2 = jax.random.randint(k3, (N2,), 0, C2)
    y_pred2 = jax.random.normal(k4, (N2, C2), jnp.float32)
    acc2 = jax.block_until_ready(measure(y_true2, y_pred2, metric="acc"))
    ref2 = jnp.mean((jnp.argmax(y_pred2, -1) == y_true2).astype(jnp.float32))
    assert abs(float(acc2) - float(ref2)) < 1e-6, (acc2, ref2)

    # --- binary 1-D path: y_true (N,) {0,1}, y_pred (N,) probabilities ---
    y_true_b = jax.random.randint(k5, (N,), 0, 2)
    y_prob = jax.nn.sigmoid(jax.random.normal(k6, (N,), jnp.float32))
    acc_b = jax.block_until_ready(measure(y_true_b, y_prob, metric="acc"))
    ref_b = jnp.mean(((y_prob > 0.5).astype(jnp.int32) == y_true_b).astype(jnp.float32))
    assert abs(float(acc_b) - float(ref_b)) < 1e-6, (acc_b, ref_b)

    # --- class-parity wrapper ---
    m = Measure("acc")
    acc_cls = jax.block_until_ready(m(y_true, y_pred))
    assert abs(float(acc_cls) - float(ref)) < 1e-6, (acc_cls, ref)

    print("KERNEL_OK")
</pallas_src>

<mosaic_0001>
module attributes {stable_mosaic.version = 11 : i64} {
  func.func @_argmax_count_kernel(%arg0: i32, %arg1: i32, %arg2: memref<32x1xi32, #tpu.memory_space<vmem>>, %arg3: memref<32x8xf32, #tpu.memory_space<vmem>>, %arg4: memref<8x128xi32, #tpu.memory_space<vmem>>, %arg5: memref<32x1xi32, #tpu.memory_space<vmem>>) attributes {dimension_semantics = [#tpu.dimension_semantics<parallel>, #tpu.dimension_semantics<arbitrary>], iteration_bounds = array<i64: 2, 1>, scalar_prefetch = 0 : i64, scratch_operands = 1 : i64, tpu.core_type = #tpu.core_type<tc>, window_params = [{transform_indices = @transform_0, window_bounds = array<i64: 32, 1>}, {transform_indices = @transform_1, window_bounds = array<i64: 32, 8>}, {transform_indices = @transform_2, window_bounds = array<i64: 8, 128>}]} {
    %c0_i32 = arith.constant 0 : i32
    %0 = arith.cmpi eq, %arg1, %c0_i32 : i32
    %1 = arith.extui %0 : i1 to i32
    %c0_i32_0 = arith.constant 0 : i32
    %2 = arith.cmpi ne, %1, %c0_i32_0 : i32
    scf.if %2 {
      %c0_i32_11 = arith.constant 0 : i32
      %22 = vector.broadcast %c0_i32_11 : i32 to vector<32x1xi32>
      %c0_12 = arith.constant 0 : index
      %c0_13 = arith.constant 0 : index
      %23 = vector.load %arg5[%c0_12, %c0_13] : memref<32x1xi32, #tpu.memory_space<vmem>>, vector<32x1xi32>
      tpu.vector_store %arg5[%c0_12, %c0_13], %22 {strides = array<i32>} : memref<32x1xi32, #tpu.memory_space<vmem>>, vector<32x1xi32>,
    } else {
    }
    %c0 = arith.constant 0 : index
    %c0_1 = arith.constant 0 : index
    %3 = vector.load %arg3[%c0, %c0_1] : memref<32x8xf32, #tpu.memory_space<vmem>>, vector<32x8xf32>
    %c0_2 = arith.constant 0 : index
    %c0_3 = arith.constant 0 : index
    %4 = vector.load %arg2[%c0_2, %c0_3] : memref<32x1xi32, #tpu.memory_space<vmem>>, vector<32x1xi32>
    %cst = arith.constant dense<0xFF800000> : vector<32xf32>
    %5 = vector.multi_reduction <maximumf>, %3, %cst [1] : vector<32x8xf32> to vector<32xf32>
    %6 = vector.shape_cast %5 : vector<32xf32> to vector<32x1xf32>
    %7 = tpu.iota {dimensions = array<i32: 1>} : vector<32x8xi32>
    %8 = vector.broadcast %6 : vector<32x1xf32> to vector<32x8xf32>
    %9 = arith.cmpf oeq, %3, %8 : vector<32x8xf32>
    %c8_i32 = arith.constant 8 : i32
    %10 = vector.broadcast %c8_i32 : i32 to vector<32x8xi32>
    %11 = arith.select %9, %7, %10 : vector<32x8xi1>, vector<32x8xi32>
    %cst_4 = arith.constant dense<2147483647> : vector<32xi32>
    %12 = vector.multi_reduction <minsi>, %11, %cst_4 [1] : vector<32x8xi32> to vector<32xi32>
    %13 = vector.shape_cast %12 : vector<32xi32> to vector<32x1xi32>
    %c0_5 = arith.constant 0 : index
    %c0_6 = arith.constant 0 : index
    %14 = vector.load %arg5[%c0_5, %c0_6] : memref<32x1xi32, #tpu.memory_space<vmem>>, vector<32x1xi32>
    %15 = arith.cmpi eq, %13, %4 : vector<32x1xi32>
    %16 = arith.extui %15 : vector<32x1xi1> to vector<32x1xi32>
    %17 = arith.addi %14, %16 : vector<32x1xi32>
    %c0_7 = arith.constant 0 : index
    %c0_8 = arith.constant 0 : index
    %18 = vector.load %arg5[%c0_7, %c0_8] : memref<32x1xi32, #tpu.memory_space<vmem>>, vector<32x1xi32>
    tpu.vector_store %arg5[%c0_7, %c0_8], %17 {strides = array<i32>} : memref<32x1xi32, #tpu.memory_space<vmem>>, vector<32x1xi32>,
    %c0_i32_9 = arith.constant 0 : i32
    %19 = arith.cmpi eq, %arg1, %c0_i32_9 : i32
    %20 = arith.extui %19 : i1 to i32
    %c0_i32_10 = arith.constant 0 : i32
    %21 = arith.cmpi ne, %20, %c0_i32_10 : i32
    scf.if %21 {
      %c0_11 = arith.constant 0 : index
      %c0_12 = arith.constant 0 : index
      %22 = vector.load %arg5[%c0_11, %c0_12] : memref<32x1xi32, #tpu.memory_space<vmem>>, vector<32x1xi32>
      %23 = vector.shape_cast %22 : vector<32x1xi32> to vector<1x32x1xi32>
      %cst_13 = arith.constant dense<0> : vector<1xi32>
      %24 = vector.multi_reduction <add>, %23, %cst_13 [1, 2] : vector<1x32x1xi32> to vector<1xi32>
      %25 = vector.shape_cast %24 : vector<1xi32> to vector<1x1x1xi32>
      %26 = vector.extract %25[0, 0, 0] : i32 from vector<1x1x1xi32>
      %c0_i32_14 = arith.constant 0 : i32
      %27 = vector.broadcast %c0_i32_14 : i32 to vector<8x128xi32>
      %28 = vector.broadcast %26 : i32 to vector<8x128xi32>
      %29 = arith.addi %27, %28 : vector<8x128xi32>
      %c0_15 = arith.constant 0 : index
      %c0_16 = arith.constant 0 : index
      %30 = vector.load %arg4[%c0_15, %c0_16] : memref<8x128xi32, #tpu.memory_space<vmem>>, vector<8x128xi32>
      tpu.vector_store %arg4[%c0_15, %c0_16], %29 {strides = array<i32>} : memref<8x128xi32, #tpu.memory_space<vmem>>, vector<8x128xi32>,
    } else {
    }
    return
  }
  func.func @transform_0(%arg0: i32, %arg1: i32) -> (i32, i32) {
    %c1_i32 = arith.constant 1 : i32
    %0 = arith.muli %arg0, %c1_i32 : i32
    %1 = arith.addi %0, %arg1 : i32
    %c0_i32 = arith.constant 0 : i32
    %c0_i32_0 = arith.constant 0 : i32
    return %1, %c0_i32 : i32, i32
  }
  func.func @transform_1(%arg0: i32, %arg1: i32) -> (i32, i32) {
    %c1_i32 = arith.constant 1 : i32
    %0 = arith.muli %arg0, %c1_i32 : i32
    %1 = arith.addi %0, %arg1 : i32
    %c0_i32 = arith.constant 0 : i32
    %c0_i32_0 = arith.constant 0 : i32
    return %1, %c0_i32 : i32, i32
  }
  func.func @transform_2(%arg0: i32, %arg1: i32) -> (i32, i32) {
    %c0_i32 = arith.constant 0 : i32
    %c0_i32_0 = arith.constant 0 : i32
    return %arg0, %c0_i32 : i32, i32
  }
}

</mosaic_0001>

<bundles_post_ra>
// kernel: tpu_custom_call.1
= control target key start
LH: loop header
LB: loop body
LE: loop exit
PB: predicated region body
PF: predicated region fallthrough
CT: control target
= control target key end

     0   :  { %7 = vsyncpa [#allocation4], 0  ;;  %s765_s0 = inlined_call_operand.vmem [shape: s32[64,1], index: 0, kind: input, shape index: {}]   ;;  %s766_s1 = inlined_call_operand.vmem [shape: f32[64,8], index: 1, kind: input, shape index: {}]   ;;  %s767_s2 = inlined_call_operand.hbm [shape: s32[16,128], index: 2, kind: output, shape index: {}]  }
   0x1   :  { %9 = vsyncpa [#allocation4 + $0x1], 0  ;;  %s610_s9 = smov 0   ;;  %s612_s10 = smov 0  }
   0x2   :  { %s614_s11 = smov 0   ;;  %s616_s12 = smov 0  }
   0x3   :  { %s618_s13 = smov 0   ;;  %s620_s14 = smov 0  }
   0x4 LB: > { %s441_s15 = sadd.s32 4294967295, %s591_s14   ;;  %s442_s16 = sadd.s32 4294967294, %s591_s14   ;;  %s591_s14 = sphi %s620_s14, %s15_s14   ;;  %s587_s13 = sphi %s618_s13, %s774_s13   ;;  %s583_s12 = sphi %s616_s12, %s773_s12   ;;  %s579_s11 = sphi %s614_s11, %s772_s11   ;;  %s575_s10 = sphi %s612_s10, %s771_s10   ;;  %s571_s9 = sphi %s610_s9, %s770_s9  }
   0x5   : > { %s27_s17 = sadd.s32 1, %s587_s13  ;;  %s90_s18 = sadd.s32 1, %s579_s11 }
   0x6   : > { %p29_p0 = scmp.ge.s32.totalorder %s27_s17, 2  ;;  %p100_p1 = scmp.ne.s32.totalorder %s579_s11, %s575_s10 }
   0x7   : > { %p101_p2 = scmp.eq.s32.totalorder %s441_s15, 1  ;;  %p106_p3 = scmp.ne.s32.totalorder %s575_s10, %s571_s9 }
   0x8   : > { %s776_s17 = smov (%p29_p0, %s27_s17), 0  ;;  %p107_p5 = scmp.eq.s32.totalorder %s442_s16, 1 }
   0x9   : > { %p650_p4 = por %p101_p2, %p100_p1  ;;  %s87_s20 = ssub.s32 %s587_s13, %s776_s17 }
   0xa   : > { %p445_p6 = scmp.ge.s32.totalorder %s591_s14, 1  ;;  %p88_p7 = scmp.eq.s32.totalorder %s87_s20, 0 }
   0xb   : > { %p657_p8 = por %p107_p5, %p106_p3  ;;  %p147_p9 = scmp.lt.s32.totalorder %s591_s14, 3 }
   0xc   : > { %s663_s22 = scalar_select %p88_p7, %s579_s11, %s90_s18  }
   0xd   : > { %p148_p10 = pnand %p445_p6, %p147_p9 }
   0xe   : > { %s447_s23 = sshll.u32 (!%p148_p10), %s583_s12, 2  ;;  %vm209_vm0 = vcmask (!%p148_p10), 64512   ;;  %v222_v8 = vlaneseq (!%p148_p10)  ;;  %vm196_vm5 = vcmask (!%p148_p10), 7168   ;;  %v593_v30 = vmov (!%p148_p10), 0   ;;  %s173_s3 = sand.u32 (!%p148_p10), 1, %s575_s10  }
   0xf   : > { %151 = sbr.rel (%p148_p10) target bundleno = 720 (0x2d0), region = 28  ;;  %p178_p11 = scmp.lt.s32.totalorder (!%p148_p10), %s447_s23, 7  ;;  %197 = vst.msk [vmem:[#allocation2] sm:$0xff] (!%p148_p10), %vm196_vm5, %v593_v30  ;;  %198 = vst.msk [vmem:[#allocation2 + $0x8] sm:$0xff] (!%p148_p10), %vm196_vm5, %v593_v30 }
  0x10   : > { %v223_v9 = vand.u32 (!%p148_p10), 127, %v222_v8  ;;  %199 = vst.msk [vmem:[#allocation2 + $0x10] sm:$0xff] (!%p148_p10), %vm196_vm5, %v593_v30  ;;  %200 = vst.msk [vmem:[#allocation2 + $0x18] sm:$0xff] (!%p148_p10), %vm196_vm5, %v593_v30  ;;  %s446_s4 = sshll.u32 (!%p148_p10), %s173_s3, 3  ;;  %s452_s7 = sshll.u32 (!%p148_p10), %s583_s12, 7 }
  0x11   : > { %s175_s5 = scalar_lea.vmem (!%p148_p10), [#allocation3], %s446_s4  ;;  %s720_s18 = scalar_lea.hbm (!%p148_p10), %s767_s2, %s452_s7 }
  0x12   : > { %s362_s6 = sshll.u32 (!%p148_p10), %s175_s5, 4  ;;  %s349_s20 = scalar_lea.sflag (!%p148_p10), [#allocation4], %s173_s3  ;;  %s715_s6 = int_to_ptr.vmem [resolvable:$true] %s362_s6 }
  0x13   : > { %s594_s12 = smov (!%p148_p10), [#allocation3]  }
  0x16   : > { %s778_s23 = smov (!%p178_p11, %s447_s23), 7  ;;  %v292_v57 = vld [vmem:[#allocation2] sm:$0xff] }
  0x17   : > { %s448_s24 = sshll.u32 %s778_s23, 3  ;;  %s513_s23 = scalar_lea.vmem %s715_s6, 128 }
  0x18   : > { %s189_s27 = scalar_lea.vmem %s766_s1, %s448_s24  ;;  %s695_s30 = scalar_lea.vmem %s765_s0, %s448_s24 }
  0x19   : > { %v201_v0 = vld [vmem:[%s189_s27] sm:$0xff]  ;;  %v203_v1 = vld [vmem:[%s189_s27 + $0x10] sm:$0xff]  ;;  %v202_v2 = vld [vmem:[%s189_s27 + $0x8] sm:$0xff]  ;;  %p514_p12 = scmp.ne.s32.totalorder %s715_s6, %s513_s23  ;;  %s517_s24 = sshll.u32 %s594_s12, 4  ;;  %s518_s24 = int_to_ptr.vmem [resolvable:$false] %s517_s24 }
  0x1a   : > { %v210_v3 = vsel %vm209_vm0, %v201_v0, -inf  ;;  %v216_v4 = vsel %vm209_vm0, %v203_v1, -inf  ;;  %v204_v5 = vld [vmem:[%s189_s27 + $0x18] sm:$0xff]  ;;  %v213_v6 = vsel %vm209_vm0, %v202_v2, -inf  ;;  %v205_v53 = vld [vmem:[%s695_s30] sm:$0xff]  ;;  %s519_s25 = scalar_lea.vmem %s518_s24, 256  ;;  %p520_p1 = scmp.lt.s32.totalorder %s715_s6, %s518_s24 }
  0x1b   : > { %211 = vmax.xlane.f32.xlu0 %v210_v3  ;;  %217 = vmax.xlane.f32.xlu1 %v216_v4  ;;  %v219_v7 = vsel %vm209_vm0, %v204_v5, -inf  ;;  %p515_p13 = pnand %p514_p12, %p650_p4  ;;  %p521_p2 = scmp.lt.s32.totalorder %s519_s25, %s513_s23 }
  0x1d   : > { %p516_p0 = pneg %p515_p13  ;;  %p522_p3 = por %p521_p2, %p520_p1 }
  0x1f   : > { %214 = vmax.xlane.f32.xlu0 %v213_v6  ;;  %220 = vmax.xlane.f32.xlu1 %v219_v7  ;;  %v294_v6 = vld [vmem:[#allocation2 + $0x10] sm:$0xff]  ;;  %p523_p5 = pnand %p522_p3, %p516_p0 }
  0xa8   : > { %v212_v10 = vpop.xlane.xlu0 %211  ;;  %v218_v11 = vpop.xlane.xlu1 %217 }
  0xa9   : > { %vm224_vm1 = vcmp.eq.f32.partialorder %v201_v0, %v212_v10  ;;  %vm226_vm2 = vcmp.eq.f32.partialorder %v203_v1, %v218_v11  ;;  %v206_v0 = vld [vmem:[%s695_s30 + $0x8] sm:$0xff]  ;;  %v207_v1 = vld [vmem:[%s695_s30 + $0x10] sm:$0xff] }
  0xaa   : > { %v228_v12 = vsel %vm224_vm1, %v223_v9, 8  ;;  %v230_v13 = vsel %vm226_vm2, %v223_v9, 8 }
  0xab   : > { %v232_v14 = vsel %vm209_vm0, %v228_v12, 2147483647  ;;  %v262_v15 = vsel %vm209_vm0, %v230_v13, 2147483647  ;;  %v208_v12 = vld [vmem:[%s695_s30 + $0x18] sm:$0xff] }
  0xac   : > { %v215_v16 = vpop.xlane.xlu0 %214  ;;  %v221_v17 = vpop.xlane.xlu1 %220  ;;  %v234_v18 = vshra.s32 %v232_v14, 16  ;;  %v264_v19 = vshra.s32 %v262_v15, 16  ;;  %v233_v31 = vand.u32 65535, %v232_v14  ;;  %v263_v35 = vand.u32 65535, %v262_v15 }
  0xad   : > { %vm225_vm3 = vcmp.eq.f32.partialorder %v202_v2, %v215_v16  ;;  %vm227_vm4 = vcmp.eq.f32.partialorder %v204_v5, %v221_v17  ;;  %v293_v5 = vld [vmem:[#allocation2 + $0x8] sm:$0xff]  ;;  %v295_v16 = vld [vmem:[#allocation2 + $0x18] sm:$0xff] }
  0xae   : > { %v229_v20 = vsel %vm225_vm3, %v223_v9, 8  ;;  %v231_v21 = vsel %vm227_vm4, %v223_v9, 8  ;;  %v236_v22 = vcvt.s32.f32 %v234_v18  ;;  %v266_v25 = vcvt.s32.f32 %v264_v19 }
  0xaf   : > { %v247_v23 = vsel %vm209_vm0, %v229_v20, 2147483647  ;;  %v277_v24 = vsel %vm209_vm0, %v231_v21, 2147483647  ;;  %v235_v33 = vcvt.s32.f32 %v233_v31  ;;  %v265_v40 = vcvt.s32.f32 %v263_v35 }
  0xb0   : > { %237 = vmin.xlane.f32.xlu0 %v236_v22  ;;  %v249_v26 = vshra.s32 %v247_v23, 16  ;;  %v279_v27 = vshra.s32 %v277_v24, 16  ;;  %v248_v34 = vand.u32 65535, %v247_v23  ;;  %v278_v41 = vand.u32 65535, %v277_v24 }
  0xb2   : > { %v251_v28 = vcvt.s32.f32 %v249_v26  ;;  %v281_v29 = vcvt.s32.f32 %v279_v27  ;;  %v250_v39 = vcvt.s32.f32 %v248_v34  ;;  %v280_v45 = vcvt.s32.f32 %v278_v41 }
  0xb4   : > { %267 = vmin.xlane.f32.xlu0 %v266_v25  ;;  %252 = vmin.xlane.f32.xlu1 %v251_v28 }
  0xb8   : > { %282 = vmin.xlane.f32.xlu1 %v281_v29 }
 0x13d   : > { %v238_v32 = vpop.xlane.xlu0 %237 }
 0x13e   : > { %vm239_vm6 = vcmp.eq.f32.partialorder %v236_v22, %v238_v32  ;;  %v244_v47 = vcvt.f32.s32 %v238_v32 }
 0x13f   : > { %v240_v36 = vsel %vm239_vm6, %v235_v33, inf }
 0x140   : > { %241 = vmin.xlane.f32.xlu0 %v240_v36  ;;  %v245_v51 = vshll.u32 %v244_v47, 16 }
 0x141   : > { %v253_v37 = vpop.xlane.xlu1 %252  ;;  %v268_v38 = vpop.xlane.xlu0 %267 }
 0x142   : > { %vm254_vm7 = vcmp.eq.f32.partialorder %v251_v28, %v253_v37  ;;  %vm269_vm8 = vcmp.eq.f32.partialorder %v266_v25, %v268_v38  ;;  %v259_v48 = vcvt.f32.s32 %v253_v37  ;;  %v274_v49 = vcvt.f32.s32 %v268_v38 }
 0x143   : > { %v255_v42 = vsel %vm254_vm7, %v250_v39, inf  ;;  %v270_v43 = vsel %vm269_vm8, %v265_v40, inf }
 0x144   : > { %256 = vmin.xlane.f32.xlu1 %v255_v42  ;;  %271 = vmin.xlane.f32.xlu0 %v270_v43  ;;  %v260_v55 = vshll.u32 %v259_v48, 16  ;;  %v275_v56 = vshll.u32 %v274_v49, 16 }
 0x145   : > { %v283_v44 = vpop.xlane.xlu1 %282 }
 0x146   : > { %vm284_vm9 = vcmp.eq.f32.partialorder %v281_v29, %v283_v44  ;;  %v289_v60 = vcvt.f32.s32 %v283_v44 }
 0x147   : > { %v285_v46 = vsel %vm284_vm9, %v280_v45, inf }
 0x148   : > { %286 = vmin.xlane.f32.xlu1 %v285_v46  ;;  %v290_v8 = vshll.u32 %v289_v60, 16 }
 0x1cd   : > { %v242_v50 = vpop.xlane.xlu0 %241 }
 0x1ce   : > { %v243_v52 = vcvt.f32.s32 %v242_v50 }
 0x1d0   : > { %v246_v54 = vadd.s32 %v245_v51, %v243_v52 }
 0x1d1   : > { %v257_v58 = vpop.xlane.xlu1 %256  ;;  %v272_v59 = vpop.xlane.xlu0 %271 }
 0x1d2   : > { %vm296_vm10 = vcmp.eq.s32.totalorder %v246_v54, %v205_v53  ;;  %v258_v61 = vcvt.f32.s32 %v257_v58  ;;  %v273_v62 = vcvt.f32.s32 %v272_v59 }
 0x1d3   : > { %v300_v63 = vsel %vm296_vm10, 1, %v593_v30 }
 0x1d4   : > { %v304_v2 = vadd.s32 %v300_v63, %v292_v57  ;;  %v261_v3 = vadd.s32 %v260_v55, %v258_v61  ;;  %v276_v4 = vadd.s32 %v275_v56, %v273_v62 }
 0x1d5   : > { %v287_v7 = vpop.xlane.xlu1 %286 }
 0x1d6   : > { %309 = vst.msk [vmem:[#allocation2] sm:$0xff] %vm196_vm5, %v304_v2  ;;  %vm297_vm11 = vcmp.eq.s32.totalorder %v261_v3, %v206_v0  ;;  %vm298_vm12 = vcmp.eq.s32.totalorder %v276_v4, %v207_v1  ;;  %v288_v9 = vcvt.f32.s32 %v287_v7 }
 0x1d7   : > { %v301_v10 = vsel %vm297_vm11, 1, %v593_v30  ;;  %v302_v11 = vsel %vm298_vm12, 1, %v593_v30 }
 0x1d8   : > { %v305_v13 = vadd.s32 %v301_v10, %v293_v5  ;;  %v306_v14 = vadd.s32 %v302_v11, %v294_v6  ;;  %v291_v15 = vadd.s32 %v290_v8, %v288_v9 }
 0x1da   : > { %310 = vst.msk [vmem:[#allocation2 + $0x8] sm:$0xff] %vm196_vm5, %v305_v13  ;;  %311 = vst.msk [vmem:[#allocation2 + $0x10] sm:$0xff] %vm196_vm5, %v306_v14  ;;  %vm299_vm13 = vcmp.eq.s32.totalorder %v291_v15, %v208_v12 }
 0x1db   : > { %v303_v17 = vsel %vm299_vm13, 1, %v593_v30 }
 0x1dc   : > { %v307_v18 = vadd.s32 %v303_v17, %v295_v16 }
 0x1dd   : > { %v316_v20 = vld [vmem:[#allocation2] sm:$0xff] }
 0x1de   : > { %312 = vst.msk [vmem:[#allocation2 + $0x18] sm:$0xff] %vm196_vm5, %v307_v18  ;;  %v320_v24 = vsel %vm196_vm5, %v316_v20, 0 }
 0x1e1   : > { %v317_v19 = vld [vmem:[#allocation2 + $0x8] sm:$0xff]  ;;  %v318_v21 = vld [vmem:[#allocation2 + $0x10] sm:$0xff] }
 0x1e2   : > { %v321_v22 = vsel %vm196_vm5, %v317_v19, 0  ;;  %v322_v25 = vsel %vm196_vm5, %v318_v21, 0 }
 0x1e3   : > { %v324_v27 = vadd.s32 %v321_v22, %v320_v24 }
 0x1e5   : > { %v319_v23 = vld [vmem:[#allocation2 + $0x18] sm:$0xff] }
 0x1e6   : > { %v323_v26 = vsel %vm196_vm5, %v319_v23, 0 }
 0x1e7   : > { %v325_v28 = vadd.s32 %v323_v26, %v322_v25 }
 0x1e9   : > { %v326_v29 = vadd.s32 %v325_v28, %v324_v27 }
 0x1eb   : > { %v328_v31 = vshrl.u32 %v326_v29, 16  ;;  %v327_v30 = vand.u32 65535, %v326_v29 }
 0x1ed   : > { %v330_v32 = vcvt.s32.f32 %v328_v31  ;;  %v329_v33 = vcvt.s32.f32 %v327_v30 }
 0x1ef   : > { %333 = vadd.xlane.f32.xlu0 %v330_v32  ;;  %331 = vadd.xlane.f32.xlu1 %v329_v33 }
 0x27c   : > { %v334_v34 = vpop.xlane.xlu0 %333  ;;  %v332_v35 = vpop.xlane.xlu1 %331 }
 0x27d   : > { %v336_v36 = vcvt.f32.s32 %v334_v34  ;;  %v335_v38 = vcvt.f32.s32 %v332_v35 }
 0x27f   : > { %v337_v37 = vshll.u32 %v336_v36, 16 }
 0x281   : > { %v338_v39 = vadd.s32 %v337_v37, %v335_v38 }
 0x283   : > { %v339_v40 = vrot.slane %v338_v39, 4 }
 0x285   : > { %v340_v41 = vadd.s32 %v339_v40, %v338_v39 }
 0x287   : > { %v341_v42 = vrot.slane %v340_v41, 2 }
 0x289   : > { %v342_v43 = vadd.s32 %v341_v42, %v340_v41 }
 0x28b   : > { %v343_v44 = vrot.slane %v342_v43, 1 }
 0x28d   : > { %v344_v45 = vadd.s32 %v343_v44, %v342_v43 }
 0x28f   : > { %455 = vpush %v344_v45 }
 0x2c0   : > { %s456_s8 = spop %455 }
 0x2c1   : > { %v346_v46 = vstv %s456_s8 }
 0x2c2   : > { %347 = vst [vmem:[%s175_s5] sm:$0xff] %v346_v46 }
 0x2c3   : > { %526 = shalt.err (!%p523_p5)
}
 0x2c4   : > { %s527_s26 = scalar_lea.hbm %s720_s18, 128  ;;  %s531_s29 = scalar_lea.hbm %s767_s2, 256 }
 0x2c5   : > { %p528_p6 = scmp.ne.s32.totalorder %s720_s18, %s527_s26  ;;  %p532_p10 = scmp.lt.u32.totalorder %s720_s18, %s767_s2 }
 0x2c6   : > { %p533_p11 = scmp.lt.u32.totalorder %s531_s29, %s527_s26  ;;  %p535_p13 = scmp.lt.u32.totalorder %s527_s26, %s720_s18 }
 0x2c7   : > { %p529_p7 = pnand %p528_p6, %p650_p4 }
 0x2c8   : > { %p534_p12 = por %p533_p11, %p532_p10 }
 0x2c9   : > { %p530_p9 = pneg %p529_p7 }
 0x2ca   : > { %p536_p0 = por %p535_p13, %p534_p12 }
 0x2cc   : > { %p537_p1 = pnand %p536_p0, %p530_p9 }
 0x2ce   : > { %540 = shalt.err (!%p537_p1)
}
 0x2cf   : > { %457 = dma.vmem_to_hbm [thread:$0]  (%p650_p4), %s715_s6, 128, %s720_s18, %s349_s20  }
 0x2d0 PF: > { %p463_p2 = scmp.ge.s32.totalorder %s591_s14, 2  ;;  %s374_s4 = sand.u32 1, %s571_s9  }
 0x2d1   : > { %s375_s5 = scalar_lea.sflag [#allocation4], %s374_s4 }
 0x2d2   : > { %p460_p3 = pnand %p463_p2, %p657_p8 }
 0x2d4   : > { %566 = dma.done.wait (!%p460_p3), %s375_s5, 128  }
 0x2d5   : > { %568 = vsyncadd (!%p460_p3), %s375_s5, 4294967168  ;;  %s15_s14 = sadd.s32 1, %s591_s14   ;;  %s770_s9 = smov %s575_s10 }
 0x2d6   : > { %p12_p5 = scmp.ge.s32.totalorder %s15_s14, 4   ;;  %s771_s10 = smov %s579_s11 }
 0x2d7   : > { %s772_s11 = smov %s663_s22  ;;  %s773_s12 = smov %s587_s13 }
 0x2d8   : > { %s774_s13 = smov %s776_s17  ;;  %14 = sbr.rel (!%p12_p5) target bundleno = 4 (0x4), region = 74 }
 0x2df   :  { %380 = vsyncpa [#allocation4], 1 }
 0x2e0   :  { %382 = vsyncpa [#allocation4 + $0x1], 1 }

</bundles_post_ra>
